<compile_context>
chip_gen: v7x
topology: tpu7x:2x2x1
jax: 0.10.0
libtpu: 0.0.40
codegen_flags: <defaults>
</compile_context>

<pallas_src>
import functools

import jax
import jax.numpy as jnp
from jax import lax
from jax.experimental import pallas as pl
from jax.experimental.pallas import tpu as pltpu


def _mlp_kernel(x_ref, w1t_ref, b1_ref, w2t_ref, b2_ref, w3_ref, b3_ref, o_ref):
    # x_ref:  (block_b, D) f32 (natural layout, contiguous DMA)
    # w1t_ref: (128, D) bf16, w2t_ref: (64, 128) bf16
    # b1_ref: (128, 1) f32, b2_ref/w3_ref: (64, 1) f32, b3_ref: (1, 1) f32
    # o_ref:  (1, block_b) f32 (batch on lanes -> lane-dense store)
    xb = x_ref[...].astype(jnp.bfloat16)                       # (block_b, D)

    # fc1 + ReLU: h1^T = W1^T @ x^T, contracting on D (rhs transposed form).
    h1 = lax.dot_general(
        w1t_ref[...], xb,
        dimension_numbers=(((1,), (1,)), ((), ())),
        preferred_element_type=jnp.float32)                    # (128, block_b)
    h1 = jnp.maximum(h1 + b1_ref[...], 0.0)

    # fc2 + ReLU: (64, 128) @ (128, block_b) -> (64, block_b)
    h2 = jnp.dot(w2t_ref[...], h1.astype(jnp.bfloat16),
                 preferred_element_type=jnp.float32)
    h2 = jnp.maximum(h2 + b2_ref[...], 0.0)

    # fc3 as VPU multiply + sublane reduce (MXU N=1 matmul not worth it) + bias.
    z = jnp.sum(h2 * w3_ref[...], axis=0, keepdims=True) + b3_ref[...]  # (1, block_b)

    # Sigmoid epilogue (exact form; (1, block_b) row is negligible cost).
    o_ref[...] = (1.0 / (1.0 + jnp.exp(-z))).astype(o_ref.dtype)


@functools.partial(jax.jit, static_argnames=("block_b",))
def cnn_model_forward(x, kparams, block_b=1024):
    """relu(fc1) -> relu(fc2) -> fc3 -> sigmoid. Returns (B, 1) float32."""
    w1t, b1, w2t, b2, w3c, b3 = kparams
    B, D = x.shape
    H1 = w1t.shape[0]          # 128
    H2 = w2t.shape[0]          # 64

    # ---- static tile-size selection (all Python ints; shapes are static) ----
    b128 = pl.cdiv(B, 128) * 128                  # smallest lane-aligned batch
    bb = max(128, (min(block_b, b128) // 128) * 128)
    # Keep >= 2 parallel tiles when the batch allows, so v7x's 2 TCs both work.
    if b128 >= 256 and pl.cdiv(b128, bb) < 2:
        bb = max(128, ((pl.cdiv(b128, 2) + 127) // 128) * 128)

    def _vmem_estimate(b):
        return (2 * b * D * 4            # double-buffered x tiles (f32)
                + 2 * b * 4              # double-buffered output row
                + b * (H1 + H2) * 4      # h1/h2 f32 intermediates
                + (H1 * D + H2 * H1) * 2 # bf16 weights (resident)
                + (H1 + 2 * H2 + 1) * 4) # biases / w3

    # Budget against the smallest generation (v7x: 64 MiB physical / 32 scoped).
    _CAP = 40 * 2 ** 20
    while bb > 128 and _vmem_estimate(bb) > _CAP:
        bb = max(128, ((bb // 2) // 128) * 128)

    num_tiles = pl.cdiv(B, bb)
    Bp = num_tiles * bb
    if Bp != B:
        x = jnp.pad(x, ((0, Bp - B), (0, 0)))     # zero-pad ragged batch

    vmem_limit = int(min(max(4 * _vmem_estimate(bb), 16 * 2 ** 20), 56 * 2 ** 20))

    out = pl.pallas_call(
        _mlp_kernel,
        out_shape=jax.ShapeDtypeStruct((1, Bp), jnp.float32),
        grid_spec=pltpu.PrefetchScalarGridSpec(
            num_scalar_prefetch=0,
            grid=(num_tiles,),
            in_specs=[
                pl.BlockSpec((bb, D), lambda i: (i, 0)),   # x tile (natural layout)
                pl.BlockSpec((H1, D), lambda i: (0, 0)),   # W1^T   (resident)
                pl.BlockSpec((H1, 1), lambda i: (0, 0)),   # b1
                pl.BlockSpec((H2, H1), lambda i: (0, 0)),  # W2^T   (resident, unpadded)
                pl.BlockSpec((H2, 1), lambda i: (0, 0)),   # b2
                pl.BlockSpec((H2, 1), lambda i: (0, 0)),   # w3 column
                pl.BlockSpec((1, 1), lambda i: (0, 0)),    # b3
            ],
            out_specs=pl.BlockSpec((1, bb), lambda i: (0, i)),   # lane-dense output
        ),
        compiler_params=pltpu.CompilerParams(
            dimension_semantics=("parallel",),
            vmem_limit_bytes=vmem_limit,
        ),
    )(x, w1t, b1, w2t, b2, w3c, b3)

    # (1, Bp) -> (Bp, 1) -> strip batch padding.
    return out.reshape(Bp, 1)[:B]


def init_params(key, input_dim):
    """PyTorch-style nn.Linear init: U(-1/sqrt(fan_in), 1/sqrt(fan_in))."""
    dims = [(input_dim, 128), (128, 64), (64, 1)]
    raw = []
    for fan_in, fan_out in dims:
        kw, kb, key = jax.random.split(key, 3)
        bound = 1.0 / jnp.sqrt(float(fan_in))
        w = jax.random.uniform(kw, (fan_in, fan_out), jnp.float32, -bound, bound)
        b = jax.random.uniform(kb, (fan_out,), jnp.float32, -bound, bound)
        raw.extend([w, b])
    return tuple(raw)


def prepare_kernel_params(raw):
    """Transpose / cast weights into the kernel's layout (one-time, no padding)."""
    w1, b1, w2, b2, w3, b3 = raw
    return (
        w1.T.astype(jnp.bfloat16),                 # (128, D)   W1^T
        b1.reshape(-1, 1).astype(jnp.float32),     # (128, 1)
        w2.T.astype(jnp.bfloat16),                 # (64, 128)  W2^T
        b2.reshape(-1, 1).astype(jnp.float32),     # (64, 1)
        w3.astype(jnp.float32),                    # (64, 1)
        b3.reshape(1, 1).astype(jnp.float32),      # (1, 1)
    )


def reference_forward(x, raw):
    """Pure-JAX reference matching the kernel numerics (bf16 MXU inputs, f32 acc)."""
    w1, b1, w2, b2, w3, b3 = raw
    h1 = jnp.maximum(
        jnp.dot(x.astype(jnp.bfloat16), w1.astype(jnp.bfloat16),
                preferred_element_type=jnp.float32) + b1, 0.0)
    h2 = jnp.maximum(
        jnp.dot(h1.astype(jnp.bfloat16), w2.astype(jnp.bfloat16),
                preferred_element_type=jnp.float32) + b2, 0.0)
    z = jnp.dot(h2, w3) + b3
    return 1.0 / (1.0 + jnp.exp(-z))


if __name__ == "__main__":
    key = jax.random.PRNGKey(0)
    kx, kp = jax.random.split(key)

    batch, input_dim = 8, 32
    x = jax.random.normal(kx, (batch, input_dim), dtype=jnp.float32)

    raw_params = init_params(kp, input_dim)
    kparams = prepare_kernel_params(raw_params)

    out = cnn_model_forward(x, kparams, block_b=1024)
    out = jax.block_until_ready(out)

    ref = reference_forward(x, raw_params)
    assert out.shape == (batch, 1), out.shape
    assert jnp.allclose(out, ref, atol=1e-4, rtol=1e-4), float(
        jnp.max(jnp.abs(out - ref)))
    print("KERNEL_OK")
</pallas_src>

<mosaic_0001>
module attributes {stable_mosaic.version = 11 : i64} {
  func.func @_mlp_kernel(%arg0: i32, %arg1: memref<128x32xf32, #tpu.memory_space<vmem>>, %arg2: memref<128x32xbf16, #tpu.memory_space<vmem>>, %arg3: memref<128x1xf32, #tpu.memory_space<vmem>>, %arg4: memref<64x128xbf16, #tpu.memory_space<vmem>>, %arg5: memref<64x1xf32, #tpu.memory_space<vmem>>, %arg6: memref<64x1xf32, #tpu.memory_space<vmem>>, %arg7: memref<1x1xf32, #tpu.memory_space<vmem>>, %arg8: memref<1x128xf32, #tpu.memory_space<vmem>>) attributes {dimension_semantics = [#tpu.dimension_semantics<parallel>], iteration_bounds = array<i64: 1>, scalar_prefetch = 0 : i64, scratch_operands = 0 : i64, tpu.core_type = #tpu.core_type<tc>, window_params = [{transform_indices = @transform_0, window_bounds = array<i64: 128, 32>}, {pipeline_mode = #tpu.pipeline_mode<synchronous>, transform_indices = @transform_1, window_bounds = array<i64: 128, 32>}, {pipeline_mode = #tpu.pipeline_mode<synchronous>, transform_indices = @transform_2, window_bounds = array<i64: 128, 1>}, {pipeline_mode = #tpu.pipeline_mode<synchronous>, transform_indices = @transform_3, window_bounds = array<i64: 64, 128>}, {pipeline_mode = #tpu.pipeline_mode<synchronous>, transform_indices = @transform_4, window_bounds = array<i64: 64, 1>}, {pipeline_mode = #tpu.pipeline_mode<synchronous>, transform_indices = @transform_5, window_bounds = array<i64: 64, 1>}, {pipeline_mode = #tpu.pipeline_mode<synchronous>, transform_indices = @transform_6, window_bounds = array<i64: 1, 1>}, {transform_indices = @transform_7, window_bounds = array<i64: 1, 128>}]} {
    %c0 = arith.constant 0 : index
    %c0_0 = arith.constant 0 : index
    %0 = vector.load %arg1[%c0, %c0_0] : memref<128x32xf32, #tpu.memory_space<vmem>>, vector<128x32xf32>
    %1 = arith.truncf %0 : vector<128x32xf32> to vector<128x32xbf16>
    %c0_1 = arith.constant 0 : index
    %c0_2 = arith.constant 0 : index
    %2 = vector.load %arg2[%c0_1, %c0_2] : memref<128x32xbf16, #tpu.memory_space<vmem>>, vector<128x32xbf16>
    %cst = arith.constant dense<0.000000e+00> : vector<128x128xf32>
    %3 = tpu.matmul %2, %1, %cst {dimension_numbers = #tpu.dot_dimension_numbers<[1], [1], [0], [0], [0, 0, 1, 0], [], []>} : vector<128x32xbf16>, vector<128x32xbf16>, vector<128x128xf32> -> vector<128x128xf32>
    %c0_3 = arith.constant 0 : index
    %c0_4 = arith.constant 0 : index
    %4 = vector.load %arg3[%c0_3, %c0_4] : memref<128x1xf32, #tpu.memory_space<vmem>>, vector<128x1xf32>
    %5 = vector.broadcast %4 : vector<128x1xf32> to vector<128x128xf32>
    %6 = arith.addf %3, %5 : vector<128x128xf32>
    %cst_5 = arith.constant 0.000000e+00 : f32
    %7 = vector.broadcast %cst_5 : f32 to vector<128x128xf32>
    %8 = arith.maximumf %6, %7 : vector<128x128xf32>
    %c0_6 = arith.constant 0 : index
    %c0_7 = arith.constant 0 : index
    %9 = vector.load %arg4[%c0_6, %c0_7] : memref<64x128xbf16, #tpu.memory_space<vmem>>, vector<64x128xbf16>
    %10 = arith.truncf %8 : vector<128x128xf32> to vector<128x128xbf16>
    %cst_8 = arith.constant dense<0.000000e+00> : vector<64x128xf32>
    %11 = tpu.matmul %9, %10, %cst_8 {dimension_numbers = #tpu.dot_dimension_numbers<[1], [0], [0], [1], [0, 0, 1, 1], [], []>} : vector<64x128xbf16>, vector<128x128xbf16>, vector<64x128xf32> -> vector<64x128xf32>
    %c0_9 = arith.constant 0 : index
    %c0_10 = arith.constant 0 : index
    %12 = vector.load %arg5[%c0_9, %c0_10] : memref<64x1xf32, #tpu.memory_space<vmem>>, vector<64x1xf32>
    %13 = vector.broadcast %12 : vector<64x1xf32> to vector<64x128xf32>
    %14 = arith.addf %11, %13 : vector<64x128xf32>
    %cst_11 = arith.constant 0.000000e+00 : f32
    %15 = vector.broadcast %cst_11 : f32 to vector<64x128xf32>
    %16 = arith.maximumf %14, %15 : vector<64x128xf32>
    %c0_12 = arith.constant 0 : index
    %c0_13 = arith.constant 0 : index
    %17 = vector.load %arg6[%c0_12, %c0_13] : memref<64x1xf32, #tpu.memory_space<vmem>>, vector<64x1xf32>
    %18 = vector.broadcast %17 : vector<64x1xf32> to vector<64x128xf32>
    %19 = arith.mulf %16, %18 : vector<64x128xf32>
    %cst_14 = arith.constant dense<0.000000e+00> : vector<128xf32>
    %20 = vector.multi_reduction <add>, %19, %cst_14 [0] : vector<64x128xf32> to vector<128xf32>
    %21 = vector.shape_cast %20 : vector<128xf32> to vector<1x128xf32>
    %c0_15 = arith.constant 0 : index
    %c0_16 = arith.constant 0 : index
    %22 = vector.load %arg7[%c0_15, %c0_16] : memref<1x1xf32, #tpu.memory_space<vmem>>, vector<1x1xf32>
    %23 = vector.broadcast %22 : vector<1x1xf32> to vector<1x128xf32>
    %24 = arith.addf %21, %23 : vector<1x128xf32>
    %cst_17 = arith.constant 0.000000e+00 : f32
    %25 = vector.broadcast %cst_17 : f32 to vector<1x128xf32>
    %26 = arith.subf %25, %24 : vector<1x128xf32>
    %27 = math.exp %26 : vector<1x128xf32>
    %cst_18 = arith.constant 1.000000e+00 : f32
    %28 = vector.broadcast %cst_18 : f32 to vector<1x128xf32>
    %29 = arith.addf %28, %27 : vector<1x128xf32>
    %cst_19 = arith.constant 1.000000e+00 : f32
    %30 = vector.broadcast %cst_19 : f32 to vector<1x128xf32>
    %31 = arith.divf %30, %29 : vector<1x128xf32>
    %c0_20 = arith.constant 0 : index
    %c0_21 = arith.constant 0 : index
    %32 = vector.load %arg8[%c0_20, %c0_21] : memref<1x128xf32, #tpu.memory_space<vmem>>, vector<1x128xf32>
    tpu.vector_store %arg8[%c0_20, %c0_21], %31 {strides = array<i32>} : memref<1x128xf32, #tpu.memory_space<vmem>>, vector<1x128xf32>,
    return
  }
  func.func @transform_0(%arg0: i32) -> (i32, i32) {
    %c0_i32 = arith.constant 0 : i32
    %c0_i32_0 = arith.constant 0 : i32
    return %arg0, %c0_i32 : i32, i32
  }
  func.func @transform_1(%arg0: i32) -> (i32, i32) {
    %c0_i32 = arith.constant 0 : i32
    %c0_i32_0 = arith.constant 0 : i32
    %c0_i32_1 = arith.constant 0 : i32
    return %c0_i32, %c0_i32_0 : i32, i32
  }
  func.func @transform_2(%arg0: i32) -> (i32, i32) {
    %c0_i32 = arith.constant 0 : i32
    %c0_i32_0 = arith.constant 0 : i32
    %c0_i32_1 = arith.constant 0 : i32
    return %c0_i32, %c0_i32_0 : i32, i32
  }
  func.func @transform_3(%arg0: i32) -> (i32, i32) {
    %c0_i32 = arith.constant 0 : i32
    %c0_i32_0 = arith.constant 0 : i32
    %c0_i32_1 = arith.constant 0 : i32
    return %c0_i32, %c0_i32_0 : i32, i32
  }
  func.func @transform_4(%arg0: i32) -> (i32, i32) {
    %c0_i32 = arith.constant 0 : i32
    %c0_i32_0 = arith.constant 0 : i32
    %c0_i32_1 = arith.constant 0 : i32
    return %c0_i32, %c0_i32_0 : i32, i32
  }
  func.func @transform_5(%arg0: i32) -> (i32, i32) {
    %c0_i32 = arith.constant 0 : i32
    %c0_i32_0 = arith.constant 0 : i32
    %c0_i32_1 = arith.constant 0 : i32
    return %c0_i32, %c0_i32_0 : i32, i32
  }
  func.func @transform_6(%arg0: i32) -> (i32, i32) {
    %c0_i32 = arith.constant 0 : i32
    %c0_i32_0 = arith.constant 0 : i32
    %c0_i32_1 = arith.constant 0 : i32
    return %c0_i32, %c0_i32_0 : i32, i32
  }
  func.func @transform_7(%arg0: i32) -> (i32, i32) {
    %c0_i32 = arith.constant 0 : i32
    %c0_i32_0 = arith.constant 0 : i32
    return %c0_i32, %arg0 : i32, i32
  }
}

</mosaic_0001>

<bundles_post_ra>
// kernel: cnn_model_forward.1
= control target key start
LH: loop header
LB: loop body
LE: loop exit
PB: predicated region body
PF: predicated region fallthrough
CT: control target
= control target key end

     0   :  { %vm205_vm0 = vcmask 261120   ;;  %v750_v3 = vmov 0   ;;  %s1001_s0 = inlined_call_operand.vmem [shape: f32[128,32], index: 0, kind: input, shape index: {}]   ;;  %s1002_s6 = inlined_call_operand.<no memory space> [shape: f32[1,1], index: 6, kind: input, shape index: {}]   ;;  %s1003_s1 = inlined_call_operand.vmem [shape: bf16[128,32], index: 1, kind: input, shape index: {}]   ;;  %s1004_s2 = inlined_call_operand.vmem [shape: f32[128,1], index: 2, kind: input, shape index: {}]   ;;  %s1005_s4 = inlined_call_operand.vmem [shape: f32[64,1], index: 4, kind: input, shape index: {}]   ;;  %s1006_s5 = inlined_call_operand.vmem [shape: f32[64,1], index: 5, kind: input, shape index: {}]   ;;  %s1007_s3 = inlined_call_operand.vmem [shape: bf16[64,128], index: 3, kind: input, shape index: {}]   ;;  %s1008_s7 = inlined_call_operand.vmem [shape: f32[1,128], index: 7, kind: output, shape index: {}]  }
   0x1   :  { %v29_v0 = vld [vmem:[%s1001_s0] sm:$0xff]  ;;  %v30_v1 = vld [vmem:[%s1001_s0 + $0x8] sm:$0xff]  ;;  %v31_v2 = vld [vmem:[%s1001_s0 + $0x10] sm:$0xff]  ;;  %732 = vset.pattern.permute.xlu0 %v750_v3  ;;  %733 = vset.pattern.permute.xlu1 %v750_v3  ;;  %v12_v4 = vstv %s1002_s6 }
   0x2   :  { %v45_v5 = vpack.c.bf16 %v30_v1, %v29_v0  ;;  %v32_v6 = vld [vmem:[%s1001_s0 + $0x18] sm:$0xff]  ;;  %13 = vst [vmem:[#allocation2] sm:$0x1] %v12_v4  ;;  %v33_v9 = vld [vmem:[%s1001_s0 + $0x20] sm:$0xff]  ;;  %v34_v10 = vld [vmem:[%s1001_s0 + $0x28] sm:$0xff] }
   0x3   :  { %v46_v7 = vpack.c.bf16 %v32_v6, %v31_v2  ;;  %v734_v11 = vld [vmem:[%s1003_s1] sm:$0xff]   ;;  %v47_v13 = vpack.c.bf16 %v34_v10, %v33_v9  ;;  %v70_v15 = vld [vmem:[%s1004_s2 + $0x8] sm:$0xff]  ;;  %v35_v16 = vld [vmem:[%s1001_s0 + $0x30] sm:$0xff] }
   0x4   :  { %723 = vmatprep.subr.msk.bf16.mxu0 %vm205_vm0, %v45_v5  ;;  %v231_v8 = vsel %vm205_vm0, %v45_v5, 0  ;;  %683 = vmatprep.mubr.msk.bf16.mxu0 %vm205_vm0, %v734_v11  ;;  %v69_v14 = vld [vmem:[%s1004_s2] sm:$0xff]  ;;  %v36_v17 = vld [vmem:[%s1001_s0 + $0x38] sm:$0xff]  ;;  %v71_v18 = vld [vmem:[%s1004_s2 + $0x10] sm:$0xff] }
   0x5   :  { %668 = vmatpush3.bf16.xpose.msra.mxu0 %v231_v8  ;;  %v234_v12 = vsel %vm205_vm0, %v46_v7, 0  ;;  %87 = vperm.xlu0 %732, %v69_v14   ;;  %v72_v19 = vld [vmem:[%s1004_s2 + $0x18] sm:$0xff]  ;;  %v237_v20 = vsel %vm205_vm0, %v47_v13, 0  ;;  %v48_v21 = vpack.c.bf16 %v36_v17, %v35_v16  ;;  %v73_v22 = vld [vmem:[%s1004_s2 + $0x20] sm:$0xff]  ;;  %v74_v23 = vld [vmem:[%s1004_s2 + $0x28] sm:$0xff] }
   0x6   :  { %724 = vmatprep.subr.msk.bf16.mxu0 %vm205_vm0, %v46_v7  ;;  %97 = vperm.xlu1 %733, %v71_v18   ;;  %v75_v24 = vld [vmem:[%s1004_s2 + $0x30] sm:$0xff]  ;;  %v37_v25 = vld [vmem:[%s1001_s0 + $0x40] sm:$0xff]  ;;  %v38_v26 = vld [vmem:[%s1001_s0 + $0x48] sm:$0xff] }
   0x7   :  { %v76_v27 = vld [vmem:[%s1004_s2 + $0x38] sm:$0xff]  ;;  %v240_v28 = vsel %vm205_vm0, %v48_v21, 0  ;;  %v49_v29 = vpack.c.bf16 %v38_v26, %v37_v25  ;;  %v77_v30 = vld [vmem:[%s1004_s2 + $0x40] sm:$0xff]  ;;  %v78_v31 = vld [vmem:[%s1004_s2 + $0x48] sm:$0xff] }
   0x8   :  { %v79_v32 = vld [vmem:[%s1004_s2 + $0x50] sm:$0xff]  ;;  %v40_v34 = vld [vmem:[%s1001_s0 + $0x58] sm:$0xff]  ;;  %v81_v38 = vld [vmem:[%s1004_s2 + $0x60] sm:$0xff] }
   0x9   :  { %92 = vperm.xlu0 %732, %v70_v15   ;;  %v39_v33 = vld [vmem:[%s1001_s0 + $0x50] sm:$0xff]  ;;  %v80_v35 = vld [vmem:[%s1004_s2 + $0x58] sm:$0xff]  ;;  %v243_v36 = vsel %vm205_vm0, %v49_v29, 0  ;;  %v82_v39 = vld [vmem:[%s1004_s2 + $0x68] sm:$0xff] }
   0xa   :  { %102 = vperm.xlu1 %733, %v72_v19   ;;  %v50_v37 = vpack.c.bf16 %v40_v34, %v39_v33  ;;  %v83_v40 = vld [vmem:[%s1004_s2 + $0x70] sm:$0xff]  ;;  %v41_v41 = vld [vmem:[%s1001_s0 + $0x60] sm:$0xff]  ;;  %v42_v42 = vld [vmem:[%s1001_s0 + $0x68] sm:$0xff] }
   0xb   :  { %v84_v43 = vld [vmem:[%s1004_s2 + $0x78] sm:$0xff]  ;;  %v51_v45 = vpack.c.bf16 %v42_v42, %v41_v41  ;;  %v383_v46 = vld [vmem:[%s1005_s4] sm:$0xff]  ;;  %v384_v47 = vld [vmem:[%s1005_s4 + $0x8] sm:$0xff] }
   0xc   :  { %v246_v44 = vsel %vm205_vm0, %v50_v37, 0  ;;  %v385_v48 = vld [vmem:[%s1005_s4 + $0x10] sm:$0xff]  ;;  %v44_v50 = vld [vmem:[%s1001_s0 + $0x78] sm:$0xff]  ;;  %v528_v54 = vld [vmem:[%s1006_s5] sm:$0xff] }
   0xd   :  { %670 = vmatpush3.bf16.xpose.msra.mxu0 %v234_v12  ;;  %107 = vperm.xlu0 %732, %v73_v22   ;;  %v43_v49 = vld [vmem:[%s1001_s0 + $0x70] sm:$0xff]  ;;  %v386_v51 = vld [vmem:[%s1005_s4 + $0x18] sm:$0xff]  ;;  %v249_v52 = vsel %vm205_vm0, %v51_v45, 0  ;;  %v529_v55 = vld [vmem:[%s1006_s5 + $0x8] sm:$0xff] }
   0xe   :  { %725 = vmatprep.subr.msk.bf16.mxu0 %vm205_vm0, %v47_v13  ;;  %112 = vperm.xlu1 %733, %v74_v23   ;;  %v52_v53 = vpack.c.bf16 %v44_v50, %v43_v49  ;;  %v387_v56 = vld [vmem:[%s1005_s4 + $0x20] sm:$0xff]  ;;  %v530_v57 = vld [vmem:[%s1006_s5 + $0x10] sm:$0xff]  ;;  %v388_v59 = vld [vmem:[%s1005_s4 + $0x28] sm:$0xff] }
   0xf   :  { %v531_v60 = vld [vmem:[%s1006_s5 + $0x18] sm:$0xff]  ;;  %v389_v61 = vld [vmem:[%s1005_s4 + $0x30] sm:$0xff]  ;;  %v735_v62 = vld [vmem:[%s1003_s1 + $0x8] sm:$0xff]  }
  0x10   :  { %v252_v58 = vsel %vm205_vm0, %v52_v53, 0  ;;  %v736_v63 = vld [vmem:[%s1003_s1 + $0x10] sm:$0xff]   ;;  %v532_v0 = vld [vmem:[%s1006_s5 + $0x20] sm:$0xff]  ;;  %v390_v1 = vld [vmem:[%s1005_s4 + $0x38] sm:$0xff] }
  0x11   :  { %117 = vperm.xlu0 %732, %v75_v24   ;;  %v533_v2 = vld [vmem:[%s1006_s5 + $0x28] sm:$0xff]  ;;  %v534_v3 = vld [vmem:[%s1006_s5 + $0x30] sm:$0xff]  ;;  %v737_v4 = vld [vmem:[%s1003_s1 + $0x18] sm:$0xff]  }
  0x12   :  { %122 = vperm.xlu1 %733, %v76_v27   ;;  %v738_v5 = vld [vmem:[%s1003_s1 + $0x20] sm:$0xff]   ;;  %v535_v6 = vld [vmem:[%s1006_s5 + $0x38] sm:$0xff]  ;;  %v739_v8 = vld [vmem:[%s1003_s1 + $0x28] sm:$0xff]  }
  0x13   :  { %v597_v7 = vld [vmem:[#allocation2] sm:$0x1]  ;;  %v740_v9 = vld [vmem:[%s1003_s1 + $0x30] sm:$0xff]   ;;  %v741_v10 = vld [vmem:[%s1003_s1 + $0x38] sm:$0xff]  }
  0x14   :  { %v742_v11 = vld [vmem:[%s1007_s3] sm:$0xff]  }
  0x15   :  { %672 = vmatpush3.bf16.xpose.msra.mxu0 %v237_v20  ;;  %127 = vperm.xlu0 %732, %v77_v30  }
  0x16   :  { %726 = vmatprep.subr.msk.bf16.mxu0 %vm205_vm0, %v48_v21  ;;  %132 = vperm.xlu1 %733, %v78_v31  }
  0x17   :  { %715 = vmatprep.mubr.bf16.mxu1 %v742_v11 }
  0x19   :  { %137 = vperm.xlu0 %732, %v79_v32  }
  0x1a   :  { %142 = vperm.xlu1 %733, %v80_v35  }
  0x1d   :  { %674 = vmatpush3.bf16.xpose.msra.mxu0 %v240_v28  ;;  %147 = vperm.xlu0 %732, %v81_v38  }
  0x1e   :  { %727 = vmatprep.subr.msk.bf16.mxu0 %vm205_vm0, %v49_v29  ;;  %152 = vperm.xlu1 %733, %v82_v39  }
  0x21   :  { %157 = vperm.xlu0 %732, %v83_v40  }
  0x22   :  { %162 = vperm.xlu1 %733, %v84_v43  }
  0x25   :  { %676 = vmatpush3.bf16.xpose.msra.mxu0 %v243_v36  ;;  %393 = vperm.xlu0 %732, %v383_v46  }
  0x26   :  { %728 = vmatprep.subr.msk.bf16.mxu0 %vm205_vm0, %v50_v37  ;;  %398 = vperm.xlu1 %733, %v384_v47  }
  0x29   :  { %403 = vperm.xlu0 %732, %v385_v48  }
  0x2a   :  { %408 = vperm.xlu1 %733, %v386_v51  }
  0x2d   :  { %678 = vmatpush3.bf16.xpose.msra.mxu0 %v246_v44  ;;  %538 = vperm.xlu0 %732, %v528_v54  }
  0x2e   :  { %729 = vmatprep.subr.msk.bf16.mxu0 %vm205_vm0, %v51_v45  ;;  %543 = vperm.xlu1 %733, %v529_v55  }
  0x31   :  { %413 = vperm.xlu0 %732, %v387_v56  }
  0x32   :  { %548 = vperm.xlu1 %733, %v530_v57  }
  0x35   :  { %680 = vmatpush3.bf16.xpose.msra.mxu0 %v249_v52  ;;  %418 = vperm.xlu0 %732, %v388_v59  }
  0x36   :  { %730 = vmatprep.subr.msk.bf16.mxu0 %vm205_vm0, %v52_v53  ;;  %553 = vperm.xlu1 %733, %v531_v60  }
  0x39   :  { %423 = vperm.xlu0 %732, %v389_v61  }
  0x3a   :  { %558 = vperm.xlu1 %733, %v532_v0  }
  0x3d   :  { %682 = vmatpush3.bf16.xpose.msra.mxu0 %v252_v58  ;;  %428 = vperm.xlu0 %732, %v390_v1  }
  0x3e   :  { %563 = vperm.xlu1 %733, %v533_v2  }
  0x41   :  { %568 = vperm.xlu0 %732, %v534_v3  }
  0x42   :  { %573 = vperm.xlu1 %733, %v535_v6  }
  0x44   :  { %684 = vmatmul.mubr.msk.bf16.vlgmr.msra.gmra.mrb[0].mxu0 %vm205_vm0, %v735_v62 }
  0x45   :  { %687 = vmatprep.mubr.msk.bf16.mxu0 %vm205_vm0, %v736_v63  ;;  %600 = vperm.xlu0 %732, %v597_v7  }
  0x4c   :  { %688 = vmatmul.mubr.msk.bf16.gmra.mrb[4].mxu0 %vm205_vm0, %v737_v4 }
  0x4d   :  { %691 = vmatprep.mubr.msk.bf16.mxu0 %vm205_vm0, %v738_v5 }
  0x54   :  { %692 = vmatmul.mubr.msk.bf16.gmra.mrb[8].mxu0 %vm205_vm0, %v739_v8 }
  0x55   :  { %695 = vmatprep.mubr.msk.bf16.mxu0 %vm205_vm0, %v740_v9 }
  0x5c   :  { %696 = vmatmul.mubr.msk.bf16.gmra.mrb[12].mxu0 %vm205_vm0, %v741_v10 }
  0x84   :  { %v88_v12 = vpop.permute.xlu0 %87 }
  0x85   :  { %v98_v13 = vpop.permute.xlu1 %97 }
  0x88   :  { %v93_v14 = vpop.permute.xlu0 %92 }
  0x89   :  { %v103_v15 = vpop.permute.xlu1 %102 }
  0x8c   :  { %v108_v16 = vpop.permute.xlu0 %107 }
  0x8d   :  { %v113_v17 = vpop.permute.xlu1 %112 }
  0x90   :  { %v118_v18 = vpop.permute.xlu0 %117 }
  0x91   :  { %v123_v22 = vpop.permute.xlu1 %122 }
  0x94   :  { %v128_v30 = vpop.permute.xlu0 %127 }
  0x95   :  { %v133_v34 = vpop.permute.xlu1 %132 }
  0x98   :  { %v138_v43 = vpop.permute.xlu0 %137 }
  0x99   :  { %v143_v47 = vpop.permute.xlu1 %142 }
  0x9c   :  { %v148_v55 = vpop.permute.xlu0 %147 }
  0x9d   :  { %v153_v60 = vpop.permute.xlu1 %152 }
  0xa0   :  { %v158_v3 = vpop.permute.xlu0 %157 }
  0xa1   :  { %v163_v8 = vpop.permute.xlu1 %162 }
 0x117   :  { %v685_v19 = vpop.f32.mrb[0].mxu0 }
 0x118   :  { %v297_v20 = vadd.f32 %v685_v19, %v98_v13  ;;  %v288_v21 = vpop.f32.mrb[1].mxu0 }
 0x119   :  { %v289_v23 = vadd.f32 %v288_v21, %v88_v12  ;;  %v686_v24 = vpop.f32.mrb[2].mxu0  ;;  %v744_v21 = vld [vmem:[%s1007_s3 + $0x10] sm:$0xff]  }
 0x11a   :  { %v300_v25 = vadd.f32 %v686_v24, %v103_v15  ;;  %v291_v26 = vpop.f32.mrb[3].mxu0  ;;  %v353_v28 = vmax.f32 %v297_v20, 0.0  ;;  %v743_v20 = vld [vmem:[%s1007_s3 + $0x8] sm:$0xff]   ;;  %v399_v24 = vpop.permute.xlu1 %398 }
 0x11b   :  { %v292_v27 = vadd.f32 %v291_v26, %v93_v14  ;;  %v351_v31 = vmax.f32 %v289_v23, 0.0  ;;  %v394_v23 = vpop.permute.xlu0 %393 }
 0x11c   :  { %v354_v29 = vmax.f32 %v300_v25, 0.0 }
 0x11d   :  { %v352_v32 = vmax.f32 %v292_v27, 0.0 }
 0x11e   :  { %v376_v33 = vpack.c.bf16 %v354_v29, %v353_v28  ;;  %v409_v26 = vpop.permute.xlu1 %408 }
 0x11f   :  { %v689_v35 = vpop.f32.mrb[4].mxu0  ;;  %v375_v36 = vpack.c.bf16 %v352_v32, %v351_v31  ;;  %v404_v25 = vpop.permute.xlu0 %403 }
 0x120   :  { %v313_v37 = vadd.f32 %v689_v35, %v118_v18  ;;  %v304_v38 = vpop.f32.mrb[5].mxu0 }
 0x121   :  { %v305_v39 = vadd.f32 %v304_v38, %v108_v16  ;;  %v690_v40 = vpop.f32.mrb[6].mxu0  ;;  %699 = vmatprep.subr.bf16.mxu1 %v375_v36 }
 0x122   :  { %v316_v41 = vadd.f32 %v690_v40, %v123_v22  ;;  %v307_v42 = vpop.f32.mrb[7].mxu0  ;;  %700 = vmatpush3.bf16.msra.mxu1 %v375_v36  ;;  %v357_v45 = vmax.f32 %v313_v37, 0.0  ;;  %v745_v22 = vld [vmem:[%s1007_s3 + $0x18] sm:$0xff]   ;;  %v544_v28 = vpop.permute.xlu1 %543 }
 0x123   :  { %v308_v44 = vadd.f32 %v307_v42, %v113_v17  ;;  %701 = vmatprep.subr.bf16.mxu1 %v376_v33  ;;  %v355_v48 = vmax.f32 %v305_v39, 0.0  ;;  %v539_v27 = vpop.permute.xlu0 %538 }
 0x124   :  { %v358_v46 = vmax.f32 %v316_v41, 0.0 }
 0x125   :  { %v356_v49 = vmax.f32 %v308_v44, 0.0 }
 0x126   :  { %v378_v50 = vpack.c.bf16 %v358_v46, %v357_v45  ;;  %702 = vmatpush3.bf16.msra.mxu1 %v376_v33 }
 0x127   :  { %v377_v51 = vpack.c.bf16 %v356_v49, %v355_v48  ;;  %v693_v52 = vpop.f32.mrb[8].mxu0  ;;  %v414_v29 = vpop.permute.xlu0 %413 }
 0x128   :  { %v329_v53 = vadd.f32 %v693_v52, %v138_v43  ;;  %v320_v54 = vpop.f32.mrb[9].mxu0 }
 0x129   :  { %v321_v56 = vadd.f32 %v320_v54, %v128_v30  ;;  %v694_v57 = vpop.f32.mrb[10].mxu0  ;;  %703 = vmatprep.subr.bf16.mxu1 %v377_v51  ;;  %v549_v30 = vpop.permute.xlu1 %548 }
 0x12a   :  { %v332_v58 = vadd.f32 %v694_v57, %v143_v47  ;;  %v323_v59 = vpop.f32.mrb[11].mxu0  ;;  %704 = vmatpush3.bf16.msra.mxu1 %v377_v51  ;;  %v361_v62 = vmax.f32 %v329_v53, 0.0 }
 0x12b   :  { %v324_v61 = vadd.f32 %v323_v59, %v133_v34  ;;  %705 = vmatprep.subr.bf16.mxu1 %v378_v50  ;;  %v359_v0 = vmax.f32 %v321_v56, 0.0  ;;  %v419_v31 = vpop.permute.xlu0 %418 }
 0x12c   :  { %v362_v63 = vmax.f32 %v332_v58, 0.0 }
 0x12d   :  { %v360_v1 = vmax.f32 %v324_v61, 0.0  ;;  %v554_v33 = vpop.permute.xlu1 %553 }
 0x12e   :  { %v380_v2 = vpack.c.bf16 %v362_v63, %v361_v62  ;;  %706 = vmatpush3.bf16.msra.mxu1 %v378_v50 }
 0x12f   :  { %v379_v4 = vpack.c.bf16 %v360_v1, %v359_v0  ;;  %v697_v5 = vpop.f32.mrb[12].mxu0  ;;  %v424_v42 = vpop.permute.xlu0 %423 }
 0x130   :  { %v345_v6 = vadd.f32 %v697_v5, %v158_v3  ;;  %v336_v7 = vpop.f32.mrb[13].mxu0 }
 0x131   :  { %v337_v9 = vadd.f32 %v336_v7, %v148_v55  ;;  %v698_v10 = vpop.f32.mrb[14].mxu0  ;;  %707 = vmatprep.subr.bf16.mxu1 %v379_v4  ;;  %v559_v45 = vpop.permute.xlu1 %558 }
 0x132   :  { %v348_v11 = vadd.f32 %v698_v10, %v163_v8  ;;  %v339_v12 = vpop.f32.mrb[15].mxu0  ;;  %708 = vmatpush3.bf16.msra.mxu1 %v379_v4  ;;  %v365_v14 = vmax.f32 %v345_v6, 0.0 }
 0x133   :  { %v340_v13 = vadd.f32 %v339_v12, %v153_v60  ;;  %709 = vmatprep.subr.bf16.mxu1 %v380_v2  ;;  %v363_v16 = vmax.f32 %v337_v9, 0.0  ;;  %v429_v56 = vpop.permute.xlu0 %428 }
 0x134   :  { %v366_v15 = vmax.f32 %v348_v11, 0.0 }
 0x135   :  { %v364_v17 = vmax.f32 %v340_v13, 0.0  ;;  %v564_v63 = vpop.permute.xlu1 %563  ;;  %v603_v13 = vlaneseq }
 0x136   :  { %v382_v18 = vpack.c.bf16 %v366_v15, %v365_v14  ;;  %710 = vmatpush3.bf16.msra.mxu1 %v380_v2 }
 0x137   :  { %v381_v19 = vpack.c.bf16 %v364_v17, %v363_v16  ;;  %v569_v7 = vpop.permute.xlu0 %568  ;;  %v604_v16 = vshrl.u32 %v603_v13, 7 }
 0x139   :  { %711 = vmatprep.subr.bf16.mxu1 %v381_v19  ;;  %v574_v10 = vpop.permute.xlu1 %573 }
 0x13a   :  { %712 = vmatpush3.bf16.msra.mxu1 %v381_v19  ;;  %v605_v19 = vsub.s32 0, %v604_v16 }
 0x13b   :  { %713 = vmatprep.subr.bf16.mxu1 %v382_v18 }
 0x13e   :  { %714 = vmatpush3.bf16.msra.mxu1 %v382_v18 }
 0x141   :  { %716 = vmatmul.mubr.bf16.vlgmr.msra.gmra.mrb[0].mxu1 %v743_v20 }
 0x142   :  { %719 = vmatprep.mubr.bf16.mxu1 %v744_v21  ;;  %v601_v21 = vpop.permute.xlu0 %600 }
 0x149   :  { %720 = vmatmul.mubr.bf16.gmra.mrb[4].mxu1 %v745_v22 }
 0x214   :  { %v717_v32 = vpop.f32.mrb[0].mxu1 }
 0x215   :  { %v489_v34 = vpop.f32.mrb[1].mxu1  ;;  %v498_v35 = vadd.f32 %v717_v32, %v404_v25 }
 0x216   :  { %v490_v36 = vadd.f32 %v489_v34, %v394_v23  ;;  %v718_v37 = vpop.f32.mrb[2].mxu1  ;;  %v606_v23 = vrot.slane %v601_v21, %v605_v19 }
 0x217   :  { %v501_v38 = vadd.f32 %v718_v37, %v409_v26  ;;  %v492_v39 = vpop.f32.mrb[3].mxu1  ;;  %v522_v43 = vmax.f32 %v498_v35, 0.0 }
 0x218   :  { %v520_v40 = vmax.f32 %v490_v36, 0.0  ;;  %v493_v41 = vadd.f32 %v492_v39, %v399_v24 }
 0x219   :  { %v523_v46 = vmax.f32 %v501_v38, 0.0  ;;  %v578_v51 = vmul.f32 %v549_v30, %v522_v43 }
 0x21a   :  { %v521_v44 = vmax.f32 %v493_v41, 0.0  ;;  %v576_v47 = vmul.f32 %v539_v27, %v520_v40 }
 0x21b   :  { %v579_v57 = vmul.f32 %v554_v33, %v523_v46 }
 0x21c   :  { %v577_v48 = vmul.f32 %v544_v28, %v521_v44  ;;  %v721_v49 = vpop.f32.mrb[4].mxu1 }
 0x21d   :  { %v505_v50 = vpop.f32.mrb[5].mxu1  ;;  %v514_v53 = vadd.f32 %v721_v49, %v424_v42 }
 0x21e   :  { %v584_v52 = vadd.f32 %v577_v48, %v576_v47  ;;  %v506_v54 = vadd.f32 %v505_v50, %v414_v29  ;;  %v722_v55 = vpop.f32.mrb[6].mxu1 }
 0x21f   :  { %v508_v58 = vpop.f32.mrb[7].mxu1  ;;  %v517_v61 = vadd.f32 %v722_v55, %v429_v56  ;;  %v526_v0 = vmax.f32 %v514_v53, 0.0 }
 0x220   :  { %v585_v59 = vadd.f32 %v584_v52, %v578_v51  ;;  %v524_v60 = vmax.f32 %v506_v54, 0.0  ;;  %v509_v62 = vadd.f32 %v508_v58, %v419_v31 }
 0x221   :  { %v527_v5 = vmax.f32 %v517_v61, 0.0  ;;  %v582_v8 = vmul.f32 %v569_v7, %v526_v0 }
 0x222   :  { %v580_v1 = vmul.f32 %v559_v45, %v524_v60  ;;  %v586_v2 = vadd.f32 %v585_v59, %v579_v57  ;;  %v525_v3 = vmax.f32 %v509_v62, 0.0 }
 0x223   :  { %v583_v11 = vmul.f32 %v574_v10, %v527_v5 }
 0x224   :  { %v587_v4 = vadd.f32 %v586_v2, %v580_v1  ;;  %v581_v6 = vmul.f32 %v564_v63, %v525_v3 }
 0x226   :  { %v588_v9 = vadd.f32 %v587_v4, %v581_v6 }
 0x228   :  { %v589_v12 = vadd.f32 %v588_v9, %v582_v8 }
 0x22a   :  { %v590_v14 = vadd.f32 %v589_v12, %v583_v11 }
 0x22c   :  { %v591_v15 = vrot.slane %v590_v14, 4 }
 0x22e   :  { %v592_v17 = vadd.f32 %v591_v15, %v590_v14 }
 0x230   :  { %v593_v18 = vrot.slane %v592_v17, 2 }
 0x232   :  { %v594_v20 = vadd.f32 %v593_v18, %v592_v17 }
 0x234   :  { %v595_v22 = vrot.slane %v594_v20, 1 }
 0x236   :  { %v596_v24 = vadd.f32 %v595_v22, %v594_v20 }
 0x238   :  { %v607_v25 = vadd.f32 %v606_v23, %v596_v24 }
 0x23a   :  { %v608_v26 = vsub.f32 0.0, %v607_v25 }
 0x23c   :  { %v609_v27 = vmul.f32 1.442695, %v608_v26 }
 0x23e   :  { %746 = vpow2.f32 %v609_v27 }
 0x248   :  { %v747_v28 = vpop.eup %746 }
 0x249   :  { %v611_v29 = vadd.f32 1.0, %v747_v28 }
 0x24b   :  { %748 = vrcp.f32 %v611_v29 }
 0x255   :  { %v749_v30 = vpop.eup %748 }
 0x256   :  { %614 = vst [vmem:[%s1008_s7] sm:$0x1] %v749_v30 }

</bundles_post_ra>
